<compile_context>
chip_gen: v7x
topology: tpu7x:2x2x1
jax: 0.10.0
libtpu: 0.0.40
codegen_flags: <defaults>
</compile_context>

<pallas_src>
import functools

import numpy as np
import jax
import jax.numpy as jnp
from jax import lax
from jax.experimental import pallas as pl
from jax.experimental.pallas import tpu as pltpu


FEAT_WINDOW = 5        # feat_window_size (module default)
DEFAULT_BLOCK_B = 8192 # batch tile (lanes of the output row); tuned per-gen via block_b


# -----------------------------------------------------------------------------
# Kernel: one batch tile.  x arrives batch-major (Bt, Fin); all downstream
# activations are feature-major (features on sublanes, batch on lanes) and the
# output is a lane-dense (1, Bt) row.
# -----------------------------------------------------------------------------
def matching_net_kernel(
    x_ref,                      # (Bt, Fin)  raw input rows (f32, row = flattened (C,L))
    w1_ref, b1_ref,             # (3H, Fin), (3H, 1)   conv1 folded (cols in c*L+l order)
    w2_ref, b2_ref,             # (2H, 3H),  (2H, 1)   conv2 folded
    w3_ref, b3_ref,             # (H,  2H),  (H,  1)   fc1 (flatten permutation folded in)
    w4_ref, b4_ref,             # (H/2, H),  (H/2, 1)  fc2
    w5_ref, b5_ref,             # (1,  H/2), (1,  1)   fc3
    o_ref,                      # (1, Bt)    sigmoid output (lane-dense)
):
    cdt = w1_ref.dtype          # matmul compute dtype (bf16 in production path)

    # Layer 1: contract the feature axis of both operands ("NT" matmul) so the
    # result is feature-major (3H, Bt) without transposing x's data.
    a = lax.dot_general(
        w1_ref[...], x_ref[...].astype(cdt),
        dimension_numbers=(((1,), (1,)), ((), ())),
        preferred_element_type=jnp.float32) + b1_ref[...]
    a = jnp.maximum(a, 0.0).astype(cdt)

    def dense(w_ref, b_ref, act):
        # (out, in) @ (in, Bt) -> f32 accumulator, bias broadcast over lanes.
        return jnp.dot(w_ref[...], act, preferred_element_type=jnp.float32) + b_ref[...]

    a = jnp.maximum(dense(w2_ref, b2_ref, a), 0.0).astype(cdt)   # conv2 folded (2H, Bt)
    a = jnp.maximum(dense(w3_ref, b3_ref, a), 0.0).astype(cdt)   # fc1          (H,  Bt)
    a = jnp.maximum(dense(w4_ref, b4_ref, a), 0.0).astype(cdt)   # fc2          (H/2,Bt)
    h = dense(w5_ref, b5_ref, a)                                 # fc3          (1,  Bt) f32

    # sigmoid: exp + approximate reciprocal both live in the otherwise-idle EUP slot.
    o_ref[...] = pl.reciprocal(1.0 + jnp.exp(-h), approx=True)


# -----------------------------------------------------------------------------
# One-time parameter re-layout (host-side, NOT in the per-call jit).
# -----------------------------------------------------------------------------
def prepare_params(params, matmul_dtype=jnp.bfloat16):
    """Fold convs into dense zero-padded matrices; fold the flatten permutations."""
    W1, b1, W2, b2, fw1, fb1, fw2, fb2, fw3, fb3 = (
        np.asarray(p, np.float32) for p in params)
    H, C, K = W1.shape            # (hidden_dim, input_dim, 3)
    Hh = fw2.shape[0]
    L0 = FEAT_WINDOW
    L1 = (L0 + 2 - 3) // 2 + 1    # 3
    L2 = (L1 + 2 - 3) // 2 + 1    # 2

    # conv1 folded: output row p*H + h; input column c*L0 + l (i.e. the natural
    # row-major flatten of a contiguous (B, C, L) input -> no transpose of x);
    # tap k satisfies l = 2p + k - 1 (stride 2, pad 1).
    Wc1 = np.zeros((L1 * H, L0 * C), np.float32)
    for p in range(L1):
        for k in range(K):
            l = 2 * p + k - 1
            if 0 <= l < L0:
                Wc1[p * H:(p + 1) * H, l::L0] = W1[:, :, k]
    bc1 = np.tile(b1, L1).reshape(L1 * H, 1)

    # conv2 folded: feature-major rows; output row q*H + h2, input row p*H + h,
    # tap k satisfies p = 2q + k - 1.
    Wc2 = np.zeros((L2 * H, L1 * H), np.float32)
    for q in range(L2):
        for k in range(K):
            p = 2 * q + k - 1
            if 0 <= p < L1:
                Wc2[q * H:(q + 1) * H, p * H:(p + 1) * H] = W2[:, :, k]
    bc2 = np.tile(b2, L2).reshape(L2 * H, 1)

    # fc1: PyTorch flattens (B, H, L2) channel-major (col = h*L2 + q); our
    # activation rows are q*H + h -> permute fc1's input columns accordingly.
    Wf1 = fw1.reshape(H, H, L2).transpose(0, 2, 1).reshape(H, L2 * H)

    weights = tuple(jnp.asarray(w, matmul_dtype) for w in (Wc1, Wc2, Wf1, fw2, fw3))
    biases = (jnp.asarray(bc1, jnp.float32),
              jnp.asarray(bc2, jnp.float32),
              jnp.asarray(fb1.reshape(H, 1), jnp.float32),
              jnp.asarray(fb2.reshape(Hh, 1), jnp.float32),
              jnp.asarray(fb3.reshape(1, 1), jnp.float32))
    return weights, biases


# -----------------------------------------------------------------------------
# Forward wrapper
# -----------------------------------------------------------------------------
@functools.partial(jax.jit, static_argnames=("block_b",))
def matching_net_forward(x, weights, biases, *, block_b=DEFAULT_BLOCK_B):
    """x: (B, C, L=5) in PyTorch NCL layout. Returns (B, 1) float32."""
    B, C, L = x.shape
    assert L == FEAT_WINDOW, "kernel specialized for feat_window_size=5"
    w1, w2, w3, w4, w5 = weights
    b1, b2, b3, b4, b5 = biases
    Fin = w1.shape[1]
    assert Fin == C * L

    # Effective batch tile:
    #  - B <= 128: one exact block (block dims equal the array dims).
    #  - otherwise: a 128-multiple <= B (ragged last tile handled by Pallas
    #    masking), so large batches keep >= 2 grid steps for megacore.
    if B <= 128:
        bb = B
    else:
        bb = max(128, min(int(block_b), (B // 128) * 128))
    n_tiles = pl.cdiv(B, bb)

    # Free view: (B, C, L) is contiguous, row b already is the C*L feature
    # vector in (c, l) order — that ordering is folded into w1's columns.
    xf = x.reshape(B, Fin)

    def resident(shape):
        # Whole array as one block, same block every grid step -> stays in VMEM.
        return pl.BlockSpec(shape, lambda i: (0, 0))

    in_specs = [pl.BlockSpec((bb, Fin), lambda i: (i, 0))]
    for w, b in zip(weights, biases):
        in_specs.append(resident(w.shape))
        in_specs.append(resident(b.shape))
    out_specs = pl.BlockSpec((1, bb), lambda i: (0, i))

    flops = 2 * B * sum(int(w.shape[0]) * int(w.shape[1]) for w in weights)
    param_bytes = sum(int(a.size) * a.dtype.itemsize for a in (*weights, *biases))
    bytes_accessed = int(xf.size) * xf.dtype.itemsize + B * 4 + param_bytes

    out = pl.pallas_call(
        matching_net_kernel,
        out_shape=jax.ShapeDtypeStruct((1, B), jnp.float32),
        grid_spec=pltpu.PrefetchScalarGridSpec(
            num_scalar_prefetch=0,
            grid=(n_tiles,),
            in_specs=in_specs,
            out_specs=out_specs,
        ),
        compiler_params=pltpu.CompilerParams(
            dimension_semantics=("parallel",),
            vmem_limit_bytes=48 * 1024 * 1024,
        ),
        cost_estimate=pl.CostEstimate(
            flops=flops, transcendentals=2 * B, bytes_accessed=bytes_accessed),
    )(xf, w1, b1, w2, b2, w3, b3, w4, b4, w5, b5)

    return out.reshape(B, 1)


# -----------------------------------------------------------------------------
# Pure-JAX reference (validation only)
# -----------------------------------------------------------------------------
def reference_forward(x, params):
    W1, b1, W2, b2, fw1, fb1, fw2, fb2, fw3, fb3 = params
    dn = ("NCH", "OIH", "NCH")
    y = lax.conv_general_dilated(
        x, W1, window_strides=(2,), padding=((1, 1),), dimension_numbers=dn)
    y = jnp.maximum(y + b1[None, :, None], 0.0)
    y = lax.conv_general_dilated(
        y, W2, window_strides=(2,), padding=((1, 1),), dimension_numbers=dn)
    y = jnp.maximum(y + b2[None, :, None], 0.0)
    f = y.reshape(y.shape[0], -1)                       # channel-major flatten
    h = jnp.maximum(f @ fw1.T + fb1, 0.0)
    h = jnp.maximum(h @ fw2.T + fb2, 0.0)
    h = h @ fw3.T + fb3
    return 1.0 / (1.0 + jnp.exp(-h))


def init_params(key, input_dim, hidden_dim):
    half = hidden_dim // 2
    L_after = 2  # 5 -> 3 -> 2
    ks = jax.random.split(key, 10)
    scale = 0.1
    W1 = scale * jax.random.normal(ks[0], (hidden_dim, input_dim, 3), jnp.float32)
    b1 = scale * jax.random.normal(ks[1], (hidden_dim,), jnp.float32)
    W2 = scale * jax.random.normal(ks[2], (hidden_dim, hidden_dim, 3), jnp.float32)
    b2 = scale * jax.random.normal(ks[3], (hidden_dim,), jnp.float32)
    fw1 = scale * jax.random.normal(ks[4], (hidden_dim, hidden_dim * L_after), jnp.float32)
    fb1 = scale * jax.random.normal(ks[5], (hidden_dim,), jnp.float32)
    fw2 = scale * jax.random.normal(ks[6], (half, hidden_dim), jnp.float32)
    fb2 = scale * jax.random.normal(ks[7], (half,), jnp.float32)
    fw3 = scale * jax.random.normal(ks[8], (1, half), jnp.float32)
    fb3 = scale * jax.random.normal(ks[9], (1,), jnp.float32)
    return (W1, b1, W2, b2, fw1, fb1, fw2, fb2, fw3, fb3)


if __name__ == "__main__":
    C, L = 4, 5        # input_dim, feat_window_size (module default)
    H = 32             # hidden_dim

    key = jax.random.PRNGKey(0)
    k_x1, k_x2, k_p = jax.random.split(key, 3)
    params = init_params(k_p, C, H)

    # --- small batch (single exact block), f32 path: validates the folding.
    #     (approx-reciprocal sigmoid contributes ~1e-4, hence 1e-3 tolerance.)
    x_small = jax.random.normal(k_x1, (2, C, L), jnp.float32)
    ref_small = reference_forward(x_small, params)
    w32, b32 = prepare_params(params, jnp.float32)
    out32 = jax.block_until_ready(matching_net_forward(x_small, w32, b32))
    assert out32.shape == (2, 1), out32.shape
    if not jnp.allclose(out32, ref_small, atol=1e-3, rtol=1e-3):
        raise AssertionError(f"f32 mismatch:\n{out32}\nvs\n{ref_small}")

    # --- production bf16 path, small batch ---
    wbf, bbf = prepare_params(params, jnp.bfloat16)
    out16 = jax.block_until_ready(matching_net_forward(x_small, wbf, bbf))
    if not jnp.allclose(out16, ref_small, atol=2e-2, rtol=2e-2):
        raise AssertionError(f"bf16 mismatch:\n{out16}\nvs\n{ref_small}")

    # --- multi-tile grid with ragged last tile (300 = 2*128 + 44), bf16 ---
    x_big = jax.random.normal(k_x2, (300, C, L), jnp.float32)
    ref_big = reference_forward(x_big, params)
    out_big = jax.block_until_ready(
        matching_net_forward(x_big, wbf, bbf, block_b=128))
    assert out_big.shape == (300, 1), out_big.shape
    if not jnp.allclose(out_big, ref_big, atol=2e-2, rtol=2e-2):
        raise AssertionError("bf16 mismatch on multi-tile batch")

    # --- same batch with the default (large) tile: single 256-wide tile + ragged tail ---
    out_big2 = jax.block_until_ready(matching_net_forward(x_big, wbf, bbf))
    if not jnp.allclose(out_big2, ref_big, atol=2e-2, rtol=2e-2):
        raise AssertionError("bf16 mismatch on default-tile batch")

    print("KERNEL_OK")
</pallas_src>

<mosaic_0001>
module attributes {stable_mosaic.version = 11 : i64} {
  func.func @matching_net_kernel(%arg0: i32, %arg1: memref<2x20xf32, #tpu.memory_space<vmem>>, %arg2: memref<96x20xf32, #tpu.memory_space<vmem>>, %arg3: memref<96x1xf32, #tpu.memory_space<vmem>>, %arg4: memref<64x96xf32, #tpu.memory_space<vmem>>, %arg5: memref<64x1xf32, #tpu.memory_space<vmem>>, %arg6: memref<32x64xf32, #tpu.memory_space<vmem>>, %arg7: memref<32x1xf32, #tpu.memory_space<vmem>>, %arg8: memref<16x32xf32, #tpu.memory_space<vmem>>, %arg9: memref<16x1xf32, #tpu.memory_space<vmem>>, %arg10: memref<1x16xf32, #tpu.memory_space<vmem>>, %arg11: memref<1x1xf32, #tpu.memory_space<vmem>>, %arg12: memref<1x2xf32, #tpu.memory_space<vmem>>) attributes {dimension_semantics = [#tpu.dimension_semantics<parallel>], iteration_bounds = array<i64: 1>, scalar_prefetch = 0 : i64, scratch_operands = 0 : i64, tpu.core_type = #tpu.core_type<tc>, window_params = [{transform_indices = @transform_0, window_bounds = array<i64: 2, 20>}, {pipeline_mode = #tpu.pipeline_mode<synchronous>, transform_indices = @transform_1, window_bounds = array<i64: 96, 20>}, {pipeline_mode = #tpu.pipeline_mode<synchronous>, transform_indices = @transform_2, window_bounds = array<i64: 96, 1>}, {pipeline_mode = #tpu.pipeline_mode<synchronous>, transform_indices = @transform_3, window_bounds = array<i64: 64, 96>}, {pipeline_mode = #tpu.pipeline_mode<synchronous>, transform_indices = @transform_4, window_bounds = array<i64: 64, 1>}, {pipeline_mode = #tpu.pipeline_mode<synchronous>, transform_indices = @transform_5, window_bounds = array<i64: 32, 64>}, {pipeline_mode = #tpu.pipeline_mode<synchronous>, transform_indices = @transform_6, window_bounds = array<i64: 32, 1>}, {pipeline_mode = #tpu.pipeline_mode<synchronous>, transform_indices = @transform_7, window_bounds = array<i64: 16, 32>}, {pipeline_mode = #tpu.pipeline_mode<synchronous>, transform_indices = @transform_8, window_bounds = array<i64: 16, 1>}, {pipeline_mode = #tpu.pipeline_mode<synchronous>, transform_indices = @transform_9, window_bounds = array<i64: 1, 16>}, {pipeline_mode = #tpu.pipeline_mode<synchronous>, transform_indices = @transform_10, window_bounds = array<i64: 1, 1>}, {transform_indices = @transform_11, window_bounds = array<i64: 1, 2>}]} {
    %c0 = arith.constant 0 : index
    %c0_0 = arith.constant 0 : index
    %0 = vector.load %arg2[%c0, %c0_0] : memref<96x20xf32, #tpu.memory_space<vmem>>, vector<96x20xf32>
    %c0_1 = arith.constant 0 : index
    %c0_2 = arith.constant 0 : index
    %1 = vector.load %arg1[%c0_1, %c0_2] : memref<2x20xf32, #tpu.memory_space<vmem>>, vector<2x20xf32>
    %cst = arith.constant dense<0.000000e+00> : vector<96x2xf32>
    %2 = tpu.matmul %0, %1, %cst {dimension_numbers = #tpu.dot_dimension_numbers<[1], [1], [0], [0], [0, 0, 1, 0], [], []>} : vector<96x20xf32>, vector<2x20xf32>, vector<96x2xf32> -> vector<96x2xf32>
    %c0_3 = arith.constant 0 : index
    %c0_4 = arith.constant 0 : index
    %3 = vector.load %arg3[%c0_3, %c0_4] : memref<96x1xf32, #tpu.memory_space<vmem>>, vector<96x1xf32>
    %4 = vector.broadcast %3 : vector<96x1xf32> to vector<96x2xf32>
    %5 = arith.addf %2, %4 : vector<96x2xf32>
    %cst_5 = arith.constant 0.000000e+00 : f32
    %6 = vector.broadcast %cst_5 : f32 to vector<96x2xf32>
    %7 = arith.maximumf %5, %6 : vector<96x2xf32>
    %c0_6 = arith.constant 0 : index
    %c0_7 = arith.constant 0 : index
    %8 = vector.load %arg4[%c0_6, %c0_7] : memref<64x96xf32, #tpu.memory_space<vmem>>, vector<64x96xf32>
    %cst_8 = arith.constant dense<0.000000e+00> : vector<64x2xf32>
    %9 = tpu.matmul %8, %7, %cst_8 {dimension_numbers = #tpu.dot_dimension_numbers<[1], [0], [0], [1], [0, 0, 1, 1], [], []>} : vector<64x96xf32>, vector<96x2xf32>, vector<64x2xf32> -> vector<64x2xf32>
    %c0_9 = arith.constant 0 : index
    %c0_10 = arith.constant 0 : index
    %10 = vector.load %arg5[%c0_9, %c0_10] : memref<64x1xf32, #tpu.memory_space<vmem>>, vector<64x1xf32>
    %11 = vector.broadcast %10 : vector<64x1xf32> to vector<64x2xf32>
    %12 = arith.addf %9, %11 : vector<64x2xf32>
    %cst_11 = arith.constant 0.000000e+00 : f32
    %13 = vector.broadcast %cst_11 : f32 to vector<64x2xf32>
    %14 = arith.maximumf %12, %13 : vector<64x2xf32>
    %c0_12 = arith.constant 0 : index
    %c0_13 = arith.constant 0 : index
    %15 = vector.load %arg6[%c0_12, %c0_13] : memref<32x64xf32, #tpu.memory_space<vmem>>, vector<32x64xf32>
    %cst_14 = arith.constant dense<0.000000e+00> : vector<32x2xf32>
    %16 = tpu.matmul %15, %14, %cst_14 {dimension_numbers = #tpu.dot_dimension_numbers<[1], [0], [0], [1], [0, 0, 1, 1], [], []>} : vector<32x64xf32>, vector<64x2xf32>, vector<32x2xf32> -> vector<32x2xf32>
    %c0_15 = arith.constant 0 : index
    %c0_16 = arith.constant 0 : index
    %17 = vector.load %arg7[%c0_15, %c0_16] : memref<32x1xf32, #tpu.memory_space<vmem>>, vector<32x1xf32>
    %18 = vector.broadcast %17 : vector<32x1xf32> to vector<32x2xf32>
    %19 = arith.addf %16, %18 : vector<32x2xf32>
    %cst_17 = arith.constant 0.000000e+00 : f32
    %20 = vector.broadcast %cst_17 : f32 to vector<32x2xf32>
    %21 = arith.maximumf %19, %20 : vector<32x2xf32>
    %c0_18 = arith.constant 0 : index
    %c0_19 = arith.constant 0 : index
    %22 = vector.load %arg8[%c0_18, %c0_19] : memref<16x32xf32, #tpu.memory_space<vmem>>, vector<16x32xf32>
    %cst_20 = arith.constant dense<0.000000e+00> : vector<16x2xf32>
    %23 = tpu.matmul %22, %21, %cst_20 {dimension_numbers = #tpu.dot_dimension_numbers<[1], [0], [0], [1], [0, 0, 1, 1], [], []>} : vector<16x32xf32>, vector<32x2xf32>, vector<16x2xf32> -> vector<16x2xf32>
    %c0_21 = arith.constant 0 : index
    %c0_22 = arith.constant 0 : index
    %24 = vector.load %arg9[%c0_21, %c0_22] : memref<16x1xf32, #tpu.memory_space<vmem>>, vector<16x1xf32>
    %25 = vector.broadcast %24 : vector<16x1xf32> to vector<16x2xf32>
    %26 = arith.addf %23, %25 : vector<16x2xf32>
    %cst_23 = arith.constant 0.000000e+00 : f32
    %27 = vector.broadcast %cst_23 : f32 to vector<16x2xf32>
    %28 = arith.maximumf %26, %27 : vector<16x2xf32>
    %c0_24 = arith.constant 0 : index
    %c0_25 = arith.constant 0 : index
    %29 = vector.load %arg10[%c0_24, %c0_25] : memref<1x16xf32, #tpu.memory_space<vmem>>, vector<1x16xf32>
    %cst_26 = arith.constant dense<0.000000e+00> : vector<1x2xf32>
    %30 = tpu.matmul %29, %28, %cst_26 {dimension_numbers = #tpu.dot_dimension_numbers<[1], [0], [0], [1], [0, 0, 1, 1], [], []>} : vector<1x16xf32>, vector<16x2xf32>, vector<1x2xf32> -> vector<1x2xf32>
    %c0_27 = arith.constant 0 : index
    %c0_28 = arith.constant 0 : index
    %31 = vector.load %arg11[%c0_27, %c0_28] : memref<1x1xf32, #tpu.memory_space<vmem>>, vector<1x1xf32>
    %32 = vector.broadcast %31 : vector<1x1xf32> to vector<1x2xf32>
    %33 = arith.addf %30, %32 : vector<1x2xf32>
    %cst_29 = arith.constant 0.000000e+00 : f32
    %34 = vector.broadcast %cst_29 : f32 to vector<1x2xf32>
    %35 = arith.subf %34, %33 : vector<1x2xf32>
    %36 = math.exp %35 : vector<1x2xf32>
    %cst_30 = arith.constant 1.000000e+00 : f32
    %37 = vector.broadcast %cst_30 : f32 to vector<1x2xf32>
    %38 = arith.addf %37, %36 : vector<1x2xf32>
    %39 = tpu.reciprocal %38 {approx = true} : vector<1x2xf32> -> vector<1x2xf32>
    %c0_31 = arith.constant 0 : index
    %c0_32 = arith.constant 0 : index
    %40 = vector.load %arg12[%c0_31, %c0_32] : memref<1x2xf32, #tpu.memory_space<vmem>>, vector<1x2xf32>
    tpu.vector_store %arg12[%c0_31, %c0_32], %39 {strides = array<i32>} : memref<1x2xf32, #tpu.memory_space<vmem>>, vector<1x2xf32>,
    return
  }
  func.func @transform_0(%arg0: i32) -> (i32, i32) {
    %c0_i32 = arith.constant 0 : i32
    %c0_i32_0 = arith.constant 0 : i32
    return %arg0, %c0_i32 : i32, i32
  }
  func.func @transform_1(%arg0: i32) -> (i32, i32) {
    %c0_i32 = arith.constant 0 : i32
    %c0_i32_0 = arith.constant 0 : i32
    %c0_i32_1 = arith.constant 0 : i32
    return %c0_i32, %c0_i32_0 : i32, i32
  }
  func.func @transform_2(%arg0: i32) -> (i32, i32) {
    %c0_i32 = arith.constant 0 : i32
    %c0_i32_0 = arith.constant 0 : i32
    %c0_i32_1 = arith.constant 0 : i32
    return %c0_i32, %c0_i32_0 : i32, i32
  }
  func.func @transform_3(%arg0: i32) -> (i32, i32) {
    %c0_i32 = arith.constant 0 : i32
    %c0_i32_0 = arith.constant 0 : i32
    %c0_i32_1 = arith.constant 0 : i32
    return %c0_i32, %c0_i32_0 : i32, i32
  }
  func.func @transform_4(%arg0: i32) -> (i32, i32) {
    %c0_i32 = arith.constant 0 : i32
    %c0_i32_0 = arith.constant 0 : i32
    %c0_i32_1 = arith.constant 0 : i32
    return %c0_i32, %c0_i32_0 : i32, i32
  }
  func.func @transform_5(%arg0: i32) -> (i32, i32) {
    %c0_i32 = arith.constant 0 : i32
    %c0_i32_0 = arith.constant 0 : i32
    %c0_i32_1 = arith.constant 0 : i32
    return %c0_i32, %c0_i32_0 : i32, i32
  }
  func.func @transform_6(%arg0: i32) -> (i32, i32) {
    %c0_i32 = arith.constant 0 : i32
    %c0_i32_0 = arith.constant 0 : i32
    %c0_i32_1 = arith.constant 0 : i32
    return %c0_i32, %c0_i32_0 : i32, i32
  }
  func.func @transform_7(%arg0: i32) -> (i32, i32) {
    %c0_i32 = arith.constant 0 : i32
    %c0_i32_0 = arith.constant 0 : i32
    %c0_i32_1 = arith.constant 0 : i32
    return %c0_i32, %c0_i32_0 : i32, i32
  }
  func.func @transform_8(%arg0: i32) -> (i32, i32) {
    %c0_i32 = arith.constant 0 : i32
    %c0_i32_0 = arith.constant 0 : i32
    %c0_i32_1 = arith.constant 0 : i32
    return %c0_i32, %c0_i32_0 : i32, i32
  }
  func.func @transform_9(%arg0: i32) -> (i32, i32) {
    %c0_i32 = arith.constant 0 : i32
    %c0_i32_0 = arith.constant 0 : i32
    %c0_i32_1 = arith.constant 0 : i32
    return %c0_i32, %c0_i32_0 : i32, i32
  }
  func.func @transform_10(%arg0: i32) -> (i32, i32) {
    %c0_i32 = arith.constant 0 : i32
    %c0_i32_0 = arith.constant 0 : i32
    %c0_i32_1 = arith.constant 0 : i32
    return %c0_i32, %c0_i32_0 : i32, i32
  }
  func.func @transform_11(%arg0: i32) -> (i32, i32) {
    %c0_i32 = arith.constant 0 : i32
    %c0_i32_0 = arith.constant 0 : i32
    return %c0_i32, %arg0 : i32, i32
  }
}

</mosaic_0001>

<bundles_post_ra>
// kernel: matching_net_forward.1
= control target key start
LH: loop header
LB: loop body
LE: loop exit
PB: predicated region body
PF: predicated region fallthrough
CT: control target
= control target key end

     0   :  { %s1365_s0 = inlined_call_operand.vmem [shape: f32[2,20], index: 0, kind: input, shape index: {}]   ;;  %s1366_s1 = inlined_call_operand.vmem [shape: f32[96,20], index: 1, kind: input, shape index: {}]   ;;  %s1367_s2 = inlined_call_operand.vmem [shape: f32[96,1], index: 2, kind: input, shape index: {}]   ;;  %s1368_s3 = inlined_call_operand.vmem [shape: f32[64,96], index: 3, kind: input, shape index: {}]   ;;  %s1369_s4 = inlined_call_operand.vmem [shape: f32[64,1], index: 4, kind: input, shape index: {}]   ;;  %s1370_s5 = inlined_call_operand.vmem [shape: f32[32,64], index: 5, kind: input, shape index: {}]   ;;  %s1371_s6 = inlined_call_operand.vmem [shape: f32[32,1], index: 6, kind: input, shape index: {}]   ;;  %s1372_s7 = inlined_call_operand.vmem [shape: f32[16,32], index: 7, kind: input, shape index: {}]   ;;  %s1373_s8 = inlined_call_operand.vmem [shape: f32[16,1], index: 8, kind: input, shape index: {}]   ;;  %s1374_s9 = inlined_call_operand.vmem [shape: f32[1,16], index: 9, kind: input, shape index: {}]   ;;  %s1375_s10 = inlined_call_operand.<no memory space> [shape: f32[1,1], index: 10, kind: input, shape index: {}]   ;;  %s1376_s11 = inlined_call_operand.hbm [shape: f32[1,2], index: 11, kind: output, shape index: {}]  }
   0x1   :  { %v16_v0 = vstv %s1375_s10 }
   0x2   :  { %17 = vst [vmem:[#allocation2] sm:$0x1] %v16_v0 }
   0x3   :  { %v53_v1 = vld [vmem:[%s1365_s0] sm:$0x3]  ;;  %vm126_vm0 = vcmask 162816   ;;  %v42_v3 = vld [vmem:[%s1366_s1 + $0x8] sm:$0xff]  ;;  %v1095_v4 = vmov 0   ;;  %v43_v5 = vld [vmem:[%s1366_s1 + $0x10] sm:$0xff] }
   0x4   :  { %v41_v2 = vld [vmem:[%s1366_s1] sm:$0xff]  ;;  %913 = vmatprep.subr.msk.mxu0 %vm126_vm0, %v53_v1  ;;  %1065 = vset.pattern.permute.xlu0 %v1095_v4  ;;  %v56_v7 = vld [vmem:[%s1367_s2 + $0x10] sm:$0xff]  ;;  %v44_v8 = vld [vmem:[%s1366_s1 + $0x18] sm:$0xff] }
   0x5   :  { %915 = vmatprep.mubr.msk.f32.mxu0 %vm126_vm0, %v41_v2  ;;  %914 = vmatpush3.xpose.msk.msra.mxu0 %vm126_vm0, %v53_v1  ;;  %v54_v6 = vld [vmem:[%s1367_s2] sm:$0xff]  ;;  %v55_v9 = vld [vmem:[%s1367_s2 + $0x8] sm:$0xff]  ;;  %v57_v11 = vld [vmem:[%s1367_s2 + $0x18] sm:$0xff] }
   0x6   :  { %1066 = vset.pattern.permute.xlu1 %v1095_v4  ;;  %68 = vperm.xlu0 %1065, %v54_v6   ;;  %v45_v10 = vld [vmem:[%s1366_s1 + $0x20] sm:$0xff]  ;;  %v46_v12 = vld [vmem:[%s1366_s1 + $0x28] sm:$0xff]  ;;  %v47_v14 = vld [vmem:[%s1366_s1 + $0x30] sm:$0xff] }
   0x7   :  { %78 = vperm.xlu1 %1066, %v56_v7   ;;  %v58_v13 = vld [vmem:[%s1367_s2 + $0x20] sm:$0xff]  ;;  %v59_v15 = vld [vmem:[%s1367_s2 + $0x28] sm:$0xff] }
   0x8   :  { %916 = vmatmul.mubr.msk.f32.vlgmr.msra.gmra.mrb[0].mxu0 %vm126_vm0, %v42_v3 }
   0x9   :  { %918 = vmatprep.mubr.msk.f32.mxu0 %vm126_vm0, %v43_v5 }
   0xa   :  { %73 = vperm.xlu0 %1065, %v55_v9  }
   0xb   :  { %83 = vperm.xlu1 %1066, %v57_v11  }
   0xc   :  { %919 = vmatmul.mubr.msk.f32.gmra.mrb[2].mxu0 %vm126_vm0, %v44_v8 }
   0xd   :  { %921 = vmatprep.mubr.msk.f32.mxu0 %vm126_vm0, %v45_v10 }
   0xe   :  { %88 = vperm.xlu0 %1065, %v58_v13  }
  0x10   :  { %922 = vmatmul.mubr.msk.f32.gmra.mrb[4].mxu0 %vm126_vm0, %v46_v12 }
  0x11   :  { %18 = vsyncpa [#allocation4], 0  ;;  %924 = vmatprep.mubr.msk.f32.mxu0 %vm126_vm0, %v47_v14  ;;  %v48_v16 = vld [vmem:[%s1366_s1 + $0x38] sm:$0xff]  ;;  %v60_v17 = vld [vmem:[%s1367_s2 + $0x30] sm:$0xff]  ;;  %93 = vperm.xlu1 %1066, %v59_v15   ;;  %vm359_vm1 = vcmask 785408   ;;  %vm525_vm2 = vcmask 523264  }
  0x12   :  { %v49_v18 = vld [vmem:[%s1366_s1 + $0x40] sm:$0xff]  ;;  %v61_v19 = vld [vmem:[%s1367_s2 + $0x38] sm:$0xff]  ;;  %98 = vperm.xlu0 %1065, %v60_v17   ;;  %v50_v20 = vld [vmem:[%s1366_s1 + $0x48] sm:$0xff]  ;;  %vm641_vm3 = vcmask 261120   ;;  %vm1097_vm4 = vmmov 0   ;;  %vm736_vm5 = vcmask 130048  }
  0x13   :  { %v62_v21 = vld [vmem:[%s1367_s2 + $0x40] sm:$0xff]  ;;  %v51_v22 = vld [vmem:[%s1366_s1 + $0x50] sm:$0xff]  ;;  %v63_v23 = vld [vmem:[%s1367_s2 + $0x48] sm:$0xff]  ;;  %vm815_vm6 = vcmask 8192  }
  0x14   :  { %925 = vmatmul.mubr.msk.f32.gmra.mrb[6].mxu0 %vm126_vm0, %v48_v16  ;;  %v52_v24 = vld [vmem:[%s1366_s1 + $0x58] sm:$0xff]  ;;  %v64_v25 = vld [vmem:[%s1367_s2 + $0x50] sm:$0xff]  ;;  %v311_v27 = vld [vmem:[%s1369_s4] sm:$0xff] }
  0x15   :  { %927 = vmatprep.mubr.msk.f32.mxu0 %vm126_vm0, %v49_v18  ;;  %103 = vperm.xlu1 %1066, %v61_v19   ;;  %v65_v26 = vld [vmem:[%s1367_s2 + $0x58] sm:$0xff]  ;;  %v312_v28 = vld [vmem:[%s1369_s4 + $0x8] sm:$0xff]  ;;  %v313_v29 = vld [vmem:[%s1369_s4 + $0x10] sm:$0xff] }
  0x16   :  { %108 = vperm.xlu0 %1065, %v62_v21   ;;  %v314_v30 = vld [vmem:[%s1369_s4 + $0x18] sm:$0xff]  ;;  %v315_v31 = vld [vmem:[%s1369_s4 + $0x20] sm:$0xff]  ;;  %v316_v32 = vld [vmem:[%s1369_s4 + $0x28] sm:$0xff] }
  0x17   :  { %v317_v33 = vld [vmem:[%s1369_s4 + $0x30] sm:$0xff]  ;;  %v318_v34 = vld [vmem:[%s1369_s4 + $0x38] sm:$0xff]  ;;  %v501_v35 = vld [vmem:[%s1371_s6] sm:$0xff] }
  0x18   :  { %928 = vmatmul.mubr.msk.f32.gmra.mrb[8].mxu0 %vm126_vm0, %v50_v20  ;;  %v502_v36 = vld [vmem:[%s1371_s6 + $0x8] sm:$0xff]  ;;  %v503_v37 = vld [vmem:[%s1371_s6 + $0x10] sm:$0xff]  ;;  %v504_v38 = vld [vmem:[%s1371_s6 + $0x18] sm:$0xff] }
  0x19   :  { %930 = vmatprep.mubr.msk.f32.mxu0 %vm126_vm0, %v51_v22  ;;  %113 = vperm.xlu1 %1066, %v63_v23   ;;  %v629_v39 = vld [vmem:[%s1373_s8] sm:$0xff]  ;;  %v630_v40 = vld [vmem:[%s1373_s8 + $0x8] sm:$0xff] }
  0x1a   :  { %118 = vperm.xlu0 %1065, %v64_v25   ;;  %v726_v41 = vld [vmem:[#allocation2] sm:$0x1] }
  0x1b   :  { %v303_v42 = vld [vmem:[%s1368_s3] sm:$0xff] }
  0x1c   :  { %931 = vmatmul.mubr.msk.f32.gmra.mrb[10].mxu0 %vm126_vm0, %v52_v24  ;;  %957 = vmatprep.mubr.msk.f32.mxu1 %vm359_vm1, %v303_v42 }
  0x1d   :  { %123 = vperm.xlu1 %1066, %v65_v26  }
  0x1e   :  { %321 = vperm.xlu0 %1065, %v311_v27  }
  0x21   :  { %326 = vperm.xlu1 %1066, %v312_v28  }
  0x22   :  { %331 = vperm.xlu0 %1065, %v313_v29  }
  0x25   :  { %336 = vperm.xlu1 %1066, %v314_v30  }
  0x26   :  { %341 = vperm.xlu0 %1065, %v315_v31  }
  0x29   :  { %346 = vperm.xlu1 %1066, %v316_v32  }
  0x2a   :  { %351 = vperm.xlu0 %1065, %v317_v33   ;;  %v304_v33 = vld [vmem:[%s1368_s3 + $0x8] sm:$0xff] }
  0x2d   :  { %356 = vperm.xlu1 %1066, %v318_v34   ;;  %v305_v34 = vld [vmem:[%s1368_s3 + $0x10] sm:$0xff] }
  0x2e   :  { %507 = vperm.xlu0 %1065, %v501_v35   ;;  %v306_v35 = vld [vmem:[%s1368_s3 + $0x18] sm:$0xff] }
  0x31   :  { %512 = vperm.xlu1 %1066, %v502_v36   ;;  %v307_v36 = vld [vmem:[%s1368_s3 + $0x20] sm:$0xff] }
  0x32   :  { %517 = vperm.xlu0 %1065, %v503_v37   ;;  %v308_v37 = vld [vmem:[%s1368_s3 + $0x28] sm:$0xff] }
  0x35   :  { %522 = vperm.xlu1 %1066, %v504_v38   ;;  %v309_v38 = vld [vmem:[%s1368_s3 + $0x30] sm:$0xff] }
  0x36   :  { %633 = vperm.xlu0 %1065, %v629_v39   ;;  %v310_v39 = vld [vmem:[%s1368_s3 + $0x38] sm:$0xff] }
  0x39   :  { %638 = vperm.xlu1 %1066, %v630_v40   ;;  %v497_v40 = vld [vmem:[%s1370_s5] sm:$0xff] }
  0x3a   :  { %729 = vperm.xlu0 %1065, %v726_v41   ;;  %985 = vmatprep.mubr.msk.f32.mxu0 %vm525_vm2, %v497_v40 }
  0x85   :  { %v69_v44 = vpop.permute.xlu0 %68 }
  0x86   :  { %v79_v43 = vpop.permute.xlu1 %78 }
  0x89   :  { %v74_v46 = vpop.permute.xlu0 %73 }
  0x8a   :  { %v84_v45 = vpop.permute.xlu1 %83 }
  0x8d   :  { %v89_v52 = vpop.permute.xlu0 %88 }
  0x90   :  { %v94_v50 = vpop.permute.xlu1 %93 }
  0x91   :  { %v99_v0 = vpop.permute.xlu0 %98 }
  0x94   :  { %v104_v61 = vpop.permute.xlu1 %103 }
  0x95   :  { %v109_v13 = vpop.permute.xlu0 %108 }
  0x98   :  { %v114_v10 = vpop.permute.xlu1 %113 }
  0x99   :  { %v119_v25 = vpop.permute.xlu0 %118 }
  0x9c   :  { %v124_v22 = vpop.permute.xlu1 %123 }
  0x9d   :  { %v322_v42 = vpop.permute.xlu0 %321 }
  0xa0   :  { %v327_v41 = vpop.permute.xlu1 %326 }
  0xdb   :  { %v917_v47 = vpop.f32.mrb[0].mxu0 }
  0xdc   :  { %v238_v48 = vadd.f32 %v917_v47, %v74_v46  ;;  %v232_v49 = vpop.f32.mrb[1].mxu0 }
  0xdd   :  { %v233_v51 = vadd.f32 %v232_v49, %v69_v44 }
  0xde   :  { %v292_v53 = vmax.f32 %v238_v48, 0.0 }
  0xdf   :  { %v291_v54 = vmax.f32 %v233_v51, 0.0  ;;  %v920_v55 = vpop.f32.mrb[2].mxu0 }
  0xe0   :  { %v248_v56 = vadd.f32 %v920_v55, %v84_v45  ;;  %v242_v57 = vpop.f32.mrb[3].mxu0  ;;  %v332_v45 = vpop.permute.xlu0 %331 }
  0xe1   :  { %v243_v58 = vadd.f32 %v242_v57, %v79_v43  ;;  %v1009_v59 = vpack.c.bf16 %v292_v53, %v291_v54  ;;  %v337_v43 = vpop.permute.xlu1 %336 }
  0xe2   :  { %v294_v60 = vmax.f32 %v248_v56, 0.0 }
  0xe3   :  { %v293_v62 = vmax.f32 %v243_v58, 0.0  ;;  %v923_v63 = vpop.f32.mrb[4].mxu0  ;;  %1010 = vmatprep.subr.bf16.mxu1 %v1009_v59 }
  0xe4   :  { %v258_v1 = vadd.f32 %v923_v63, %v94_v50  ;;  %v252_v2 = vpop.f32.mrb[5].mxu0  ;;  %1012 = vmatpush3.bf16.msra.mxu1 %v1009_v59  ;;  %v342_v57 = vpop.permute.xlu0 %341 }
  0xe5   :  { %v1013_v3 = vpack.c.bf16 %v294_v60, %v293_v62  ;;  %v253_v4 = vadd.f32 %v252_v2, %v89_v52  ;;  %v347_v54 = vpop.permute.xlu1 %346 }
  0xe6   :  { %v296_v5 = vmax.f32 %v258_v1, 0.0 }
  0xe7   :  { %v295_v6 = vmax.f32 %v253_v4, 0.0  ;;  %v926_v7 = vpop.f32.mrb[6].mxu0  ;;  %1014 = vmatprep.subr.bf16.mxu1 %v1013_v3 }
  0xe8   :  { %v268_v8 = vadd.f32 %v926_v7, %v104_v61  ;;  %v262_v9 = vpop.f32.mrb[7].mxu0  ;;  %1016 = vmatpush3.bf16.msra.mxu1 %v1013_v3 }
  0xe9   :  { %v1017_v11 = vpack.c.bf16 %v296_v5, %v295_v6  ;;  %v263_v12 = vadd.f32 %v262_v9, %v99_v0  ;;  %v357_v2 = vpop.permute.xlu1 %356  ;;  %v352_v5 = vpop.permute.xlu0 %351 }
  0xea   :  { %v298_v14 = vmax.f32 %v268_v8, 0.0 }
  0xeb   :  { %v297_v15 = vmax.f32 %v263_v12, 0.0  ;;  %v929_v16 = vpop.f32.mrb[8].mxu0  ;;  %1018 = vmatprep.subr.bf16.mxu1 %v1017_v11 }
  0xec   :  { %v278_v17 = vadd.f32 %v929_v16, %v114_v10  ;;  %v272_v18 = vpop.f32.mrb[9].mxu0  ;;  %1020 = vmatpush3.bf16.msra.mxu1 %v1017_v11  ;;  %v627_v16 = vld [vmem:[%s1372_s7] sm:$0xff] }
  0xed   :  { %v1021_v19 = vpack.c.bf16 %v298_v14, %v297_v15  ;;  %v273_v20 = vadd.f32 %v272_v18, %v109_v13  ;;  %v498_v13 = vld [vmem:[%s1370_s5 + $0x8] sm:$0xff]  ;;  %v499_v14 = vld [vmem:[%s1370_s5 + $0x10] sm:$0xff]  ;;  %v500_v15 = vld [vmem:[%s1370_s5 + $0x18] sm:$0xff]  ;;  %v508_v18 = vpop.permute.xlu0 %507 }
  0xee   :  { %v300_v21 = vmax.f32 %v278_v17, 0.0  ;;  %v513_v17 = vpop.permute.xlu1 %512 }
  0xef   :  { %v299_v23 = vmax.f32 %v273_v20, 0.0  ;;  %v932_v24 = vpop.f32.mrb[10].mxu0  ;;  %1022 = vmatprep.subr.bf16.mxu1 %v1021_v19 }
  0xf0   :  { %v288_v26 = vadd.f32 %v932_v24, %v124_v22  ;;  %v282_v27 = vpop.f32.mrb[11].mxu0  ;;  %1024 = vmatpush3.bf16.msra.mxu1 %v1021_v19 }
  0xf1   :  { %v1025_v28 = vpack.c.bf16 %v300_v21, %v299_v23  ;;  %v283_v29 = vadd.f32 %v282_v27, %v119_v25  ;;  %v518_v27 = vpop.permute.xlu0 %517 }
  0xf2   :  { %v302_v30 = vmax.f32 %v288_v26, 0.0  ;;  %v523_v24 = vpop.permute.xlu1 %522 }
  0xf3   :  { %v301_v31 = vmax.f32 %v283_v29, 0.0  ;;  %1026 = vmatprep.subr.bf16.mxu1 %v1025_v28 }
  0xf4   :  { %1028 = vmatpush3.bf16.msra.mxu1 %v1025_v28 }
  0xf5   :  { %v1029_v32 = vpack.c.bf16 %v302_v30, %v301_v31  ;;  %v634_v40 = vpop.permute.xlu0 %633 }
  0xf7   :  { %1030 = vmatprep.subr.bf16.mxu1 %v1029_v32 }
  0xf8   :  { %1032 = vmatpush3.bf16.msra.mxu1 %v1029_v32 }
  0xfb   :  { %958 = vmatmul.mubr.msk.f32.vlgmr.msra.gmra.mrb[0].mxu1 %vm359_vm1, %v304_v33 }
  0xfc   :  { %960 = vmatprep.mubr.msk.f32.mxu1 %vm359_vm1, %v305_v34 }
  0xff   :  { %961 = vmatmul.mubr.msk.f32.gmra.mrb[2].mxu1 %vm359_vm1, %v306_v35  ;;  %v628_v35 = vld [vmem:[%s1372_s7 + $0x8] sm:$0xff]  ;;  %s1099_s7 = smov [#allocation3]  }
 0x100   :  { %963 = vmatprep.mubr.msk.f32.mxu1 %vm359_vm1, %v307_v36  ;;  %v1096_v36 = vmov 0.0|0.0   ;;  %s823_s6 = sshll.u32 %s1099_s7, 4  ;;  %s824_s6 = int_to_ptr.vmem [resolvable:$true] %s823_s6 }
 0x101   :  { %s1075_s8 = scalar_lea.vmem %s824_s6, 32  ;;  %p1076_p1 = scmp.lt.s32.totalorder %s824_s6, %s824_s6 }
 0x103   :  { %964 = vmatmul.mubr.msk.f32.gmra.mrb[4].mxu1 %vm359_vm1, %v308_v37  ;;  %v1098_v37 = vmov 0.0  }
 0x104   :  { %966 = vmatprep.mubr.msk.f32.mxu1 %vm359_vm1, %v309_v38  ;;  %v639_v38 = vpop.permute.xlu1 %638 }
 0x107   :  { %967 = vmatmul.mubr.msk.f32.gmra.mrb[6].mxu1 %vm359_vm1, %v310_v39 }
 0x1ce   :  { %v959_v44 = vpop.f32.mrb[0].mxu1 }
 0x1cf   :  { %v456_v46 = vadd.f32 %v959_v44, %v327_v41  ;;  %v450_v47 = vpop.f32.mrb[1].mxu1 }
 0x1d0   :  { %v451_v48 = vadd.f32 %v450_v47, %v322_v42  ;;  %v725_v47 = vld [vmem:[%s1374_s9] sm:$0x1]  ;;  %s1071_s9 = scalar_lea.vmem %s824_s6, 16 }
 0x1d1   :  { %v490_v49 = vmax.f32 %v456_v46, 0.0  ;;  %p1072_p0 = scmp.ne.s32.totalorder %s824_s6, %s1071_s9  ;;  %p1077_p2 = scmp.lt.s32.totalorder %s1075_s8, %s1071_s9 }
 0x1d2   :  { %v489_v50 = vmax.f32 %v451_v48, 0.0  ;;  %v962_v51 = vpop.f32.mrb[2].mxu1  ;;  %v732_v48 = vlaneseq }
 0x1d3   :  { %v466_v52 = vadd.f32 %v962_v51, %v337_v43  ;;  %v460_v53 = vpop.f32.mrb[3].mxu1  ;;  %v730_v51 = vpop.permute.xlu0 %729  ;;  %p1078_p3 = por %p1077_p2, %p1076_p1 }
 0x1d4   :  { %v1033_v55 = vpack.c.bf16 %v490_v49, %v489_v50  ;;  %v461_v56 = vadd.f32 %v460_v53, %v332_v45  ;;  %v733_v49 = vshrl.u32 %v732_v48, 7 }
 0x1d5   :  { %v492_v58 = vmax.f32 %v466_v52, 0.0  ;;  %p1079_p4 = pnand %p1078_p3, %p1072_p0 }
 0x1d6   :  { %v491_v59 = vmax.f32 %v461_v56, 0.0  ;;  %v965_v60 = vpop.f32.mrb[4].mxu1  ;;  %1034 = vmatprep.subr.bf16.mxu0 %v1033_v55  ;;  %v734_v50 = vsub.s32 0, %v733_v49 }
 0x1d7   :  { %v476_v61 = vadd.f32 %v965_v60, %v347_v54  ;;  %v470_v62 = vpop.f32.mrb[5].mxu1  ;;  %1036 = vmatpush3.bf16.msra.mxu0 %v1033_v55 }
 0x1d8   :  { %v1037_v63 = vpack.c.bf16 %v492_v58, %v491_v59  ;;  %v471_v0 = vadd.f32 %v470_v62, %v342_v57  ;;  %v735_v52 = vrot.slane %v730_v51, %v734_v50 }
 0x1d9   :  { %v494_v1 = vmax.f32 %v476_v61, 0.0 }
 0x1da   :  { %v493_v3 = vmax.f32 %v471_v0, 0.0  ;;  %v968_v4 = vpop.f32.mrb[6].mxu1  ;;  %1038 = vmatprep.subr.bf16.mxu0 %v1037_v63 }
 0x1db   :  { %v486_v6 = vadd.f32 %v968_v4, %v357_v2  ;;  %v480_v7 = vpop.f32.mrb[7].mxu1  ;;  %1040 = vmatpush3.bf16.msra.mxu0 %v1037_v63 }
 0x1dc   :  { %v1041_v8 = vpack.c.bf16 %v494_v1, %v493_v3  ;;  %v481_v9 = vadd.f32 %v480_v7, %v352_v5 }
 0x1dd   :  { %v496_v10 = vmax.f32 %v486_v6, 0.0 }
 0x1de   :  { %v495_v11 = vmax.f32 %v481_v9, 0.0  ;;  %1042 = vmatprep.subr.bf16.mxu0 %v1041_v8 }
 0x1df   :  { %1044 = vmatpush3.bf16.msra.mxu0 %v1041_v8 }
 0x1e0   :  { %v1045_v12 = vpack.c.bf16 %v496_v10, %v495_v11 }
 0x1e2   :  { %1046 = vmatprep.subr.bf16.mxu0 %v1045_v12 }
 0x1e3   :  { %1048 = vmatpush3.bf16.msra.mxu0 %v1045_v12 }
 0x1e6   :  { %986 = vmatmul.mubr.msk.f32.vlgmr.msra.gmra.mrb[12].mxu0 %vm525_vm2, %v498_v13 }
 0x1e7   :  { %988 = vmatprep.mubr.msk.f32.mxu0 %vm525_vm2, %v499_v14 }
 0x1ea   :  { %989 = vmatmul.mubr.msk.f32.gmra.mrb[14].mxu0 %vm525_vm2, %v500_v15 }
 0x1eb   :  { %999 = vmatprep.mubr.msk.f32.mxu0 %vm641_vm3, %v627_v16 }
 0x2b9   :  { %v987_v19 = vpop.f32.mrb[12].mxu0 }
 0x2ba   :  { %v610_v20 = vadd.f32 %v987_v19, %v513_v17  ;;  %v604_v21 = vpop.f32.mrb[13].mxu0 }
 0x2bb   :  { %v605_v22 = vadd.f32 %v604_v21, %v508_v18 }
 0x2bc   :  { %v624_v23 = vmax.f32 %v610_v20, 0.0 }
 0x2bd   :  { %v623_v25 = vmax.f32 %v605_v22, 0.0  ;;  %v990_v26 = vpop.f32.mrb[14].mxu0 }
 0x2be   :  { %v620_v28 = vadd.f32 %v990_v26, %v523_v24  ;;  %v614_v29 = vpop.f32.mrb[15].mxu0 }
 0x2bf   :  { %v1049_v30 = vpack.c.bf16 %v624_v23, %v623_v25  ;;  %v615_v31 = vadd.f32 %v614_v29, %v518_v27 }
 0x2c0   :  { %v626_v32 = vmax.f32 %v620_v28, 0.0 }
 0x2c1   :  { %v625_v33 = vmax.f32 %v615_v31, 0.0  ;;  %1050 = vmatprep.subr.bf16.mxu0 %v1049_v30 }
 0x2c2   :  { %1052 = vmatpush3.bf16.msra.mxu0 %v1049_v30 }
 0x2c3   :  { %v1053_v34 = vpack.c.bf16 %v626_v32, %v625_v33 }
 0x2c5   :  { %1054 = vmatprep.subr.bf16.mxu0 %v1053_v34 }
 0x2c6   :  { %1056 = vmatpush3.bf16.msra.mxu0 %v1053_v34 }
 0x2c7   :  { %1057 = vmatprep.subr.bf16.mxu0 %v1096_v36 }
 0x2c9   :  { %1000 = vmatmul.mubr.msk.f32.vlgmr.msra.gmra.mrb[16].mxu0 %vm641_vm3, %v628_v35 }
 0x2ca   :  { %1006 = vmatprep.mubr.msk.f32.mxu0 %vm1097_vm4, %v1098_v37 }
 0x39c   :  { %v1001_v39 = vpop.f32.mrb[16].mxu0 }
 0x39d   :  { %v720_v41 = vadd.f32 %v1001_v39, %v639_v38  ;;  %v714_v42 = vpop.f32.mrb[17].mxu0 }
 0x39e   :  { %v715_v43 = vadd.f32 %v714_v42, %v634_v40 }
 0x39f   :  { %v724_v44 = vmax.f32 %v720_v41, 0.0 }
 0x3a0   :  { %v723_v45 = vmax.f32 %v715_v43, 0.0 }
 0x3a2   :  { %v1058_v46 = vpack.c.bf16 %v724_v44, %v723_v45 }
 0x3a4   :  { %1059 = vmatpush3.bf16.msra.mxu0 %v1058_v46 }
 0x3a7   :  { %1007 = vmatmul.mubr.msk.f32.vlgmr.msra.gmra.mrb[18].mxu0 %vm736_vm5, %v725_v47 }
 0x47a   :  { %v806_v53 = vpop.f32.mrb[18].mxu0 }
 0x47b   :  { %v807_v54 = vadd.f32 %v806_v53, %v735_v52  ;;  %v1008_v55 = vpop.f32.mrb[19].mxu0 }
 0x47d   :  { %v810_v56 = vsub.f32 0.0, %v807_v54 }
 0x47f   :  { %v811_v57 = vmul.f32 1.442695, %v810_v56 }
 0x481   :  { %1067 = vpow2.f32 %v811_v57 }
 0x48b   :  { %v1068_v58 = vpop.eup %1067 }
 0x48c   :  { %v813_v59 = vadd.f32 1.0, %v1068_v58 }
 0x48e   :  { %1069 = vrcp.f32 %v813_v59 }
 0x498   :  { %v1070_v60 = vpop.eup %1069 }
 0x499   :  { %816 = vst.msk [vmem:[#allocation3] sm:$0x1] %vm815_vm6, %v1070_v60 }
 0x49a   :  { %1082 = shalt.err (!%p1079_p4)
}
 0x49b   :  { %s1083_s12 = scalar_lea.hbm %s1376_s11, 16 }
 0x49c   :  { %p1084_p5 = scmp.ne.s32.totalorder %s1376_s11, %s1083_s12  ;;  %p1087_p6 = scmp.lt.u32.totalorder %s1083_s12, %s1376_s11 }
 0x49e   :  { %p1089_p7 = pnand %p1087_p6, %p1084_p5 }
 0x4a0   :  { %1092 = shalt.err (!%p1089_p7)
}
 0x4a1   :  { %826 = dma.vmem_to_hbm [thread:$0]  %s824_s6, 16, %s1376_s11, [#allocation4]  }
 0x4a2   :  { %1093 = dma.done.wait [#allocation4], 16  }
 0x4a3   :  { %1094 = vsyncadd [#allocation4], 4294967280 }
 0x4a4   :  { %830 = vsyncpa [#allocation4], 1 }

</bundles_post_ra>
